<compile_context>
chip_gen: v7x
topology: tpu7x:2x2x1
jax: 0.10.0
libtpu: 0.0.40
codegen_flags: <defaults>
</compile_context>

<pallas_src>
import jax
import jax.numpy as jnp
from jax.experimental import pallas as pl
from jax.experimental.pallas import tpu as pltpu


def _round_up(a, b):
    return ((a + b - 1) // b) * b


def _make_grid_sample_kernel(H, W, tp, tk, cast_dot_bf16):
    def kernel(x_ref, g_ref, o_ref, wy0_s, wy1_s, wx0_s, wx1_s, base_s):
        # x_ref: (C, tk)   one K-tile of the flattened image (channels x H*W)
        # g_ref: (2, tp)   lane-dense coords: row 0 = gx, row 1 = gy
        # o_ref: (C, tp)   accumulated across the K grid axis (resident block)
        # *_s  : (1, tp)   per-P-tile hoisted weights / base index (VMEM scratch)
        k_idx = pl.program_id(2)

        @pl.when(k_idx == 0)
        def _init():
            o_ref[...] = jnp.zeros_like(o_ref)

            gx = g_ref[0:1, :].astype(jnp.float32)      # (1, tp), P on lanes
            gy = g_ref[1:2, :].astype(jnp.float32)

            # unnormalize (align_corners=False)
            ix = ((gx + 1.0) * W - 1.0) * 0.5
            iy = ((gy + 1.0) * H - 1.0) * 0.5
            ix0 = jnp.floor(ix)
            iy0 = jnp.floor(iy)
            wx1 = ix - ix0
            wy1 = iy - iy0
            ix0i = ix0.astype(jnp.int32)
            iy0i = iy0.astype(jnp.int32)

            # zeros-padding validity folded directly into the 1-D weight vectors
            zero = jnp.float32(0.0)
            wy0_s[...] = jnp.where((iy0i >= 0) & (iy0i < H), 1.0 - wy1, zero)
            wy1_s[...] = jnp.where((iy0i >= -1) & (iy0i < H - 1), wy1, zero)
            wx0_s[...] = jnp.where((ix0i >= 0) & (ix0i < W), 1.0 - wx1, zero)
            wx1_s[...] = jnp.where((ix0i >= -1) & (ix0i < W - 1), wx1, zero)
            # flat index of the top-left corner (global, unshifted)
            base_s[...] = iy0i * W + ix0i

        # local (per K tile) top-left corner index
        base = base_s[...] - k_idx * tk                  # (1, tp) int32
        # this K tile holds a corner iff base + {0,1,W,W+1} intersects [0, tk)
        has_corner = jnp.any((base > -(W + 2)) & (base < tk))

        @pl.when(has_corner)
        def _compute():
            zero = jnp.float32(0.0)
            wy0 = wy0_s[...]
            wy1 = wy1_s[...]
            wx0 = wx0_s[...]
            wx1 = wx1_s[...]

            # rel[k, p] = local row index k - base[p]; corners sit at {0,1,W,W+1}
            col = jax.lax.broadcasted_iota(jnp.int32, (tk, tp), 0)
            rel = col - base                             # (tk, tp)

            if W >= 2:
                # factored build (no flat-index collisions when W >= 2)
                m_r0 = (rel == 0) | (rel == 1)
                m_r1 = (rel == W) | (rel == W + 1)
                m_c0 = (rel == 0) | (rel == W)
                S = (jnp.where(m_r0, wy0, zero) + jnp.where(m_r1, wy1, zero)) \
                    * jnp.where(m_c0, wx0, wx1)
            else:
                # degenerate W==1: corner offsets collide, use the explicit sum
                S = (jnp.where(rel == 0, wy0 * wx0, zero) +
                     jnp.where(rel == 1, wy0 * wx1, zero) +
                     jnp.where(rel == W, wy1 * wx0, zero) +
                     jnp.where(rel == W + 1, wy1 * wx1, zero))

            x_t = x_ref[...].astype(jnp.float32)
            if cast_dot_bf16:
                x_t = x_t.astype(jnp.bfloat16)
                S = S.astype(jnp.bfloat16)

            # out[c, p] += sum_k x[c, k] * S[k, p]   (MXU, f32 accumulation)
            o_ref[...] += jax.lax.dot_general(
                x_t, S,
                dimension_numbers=(((1,), (0,)), ((), ())),
                preferred_element_type=jnp.float32).astype(o_ref.dtype)

    return kernel


def grid_sample_pallas(x, grid):
    """x: [N, C, H, W] f32, grid: [N, Ho, Wo, 2] f32 -> [N, C, Ho, Wo] f32."""
    N, C, H, W = x.shape
    _, Ho, Wo, _ = grid.shape
    K = H * W
    P = Ho * Wo

    # lane-dense coord layout: [N, 2, P_pad], P padded to a multiple of 128
    P_pad = _round_up(max(P, 128), 128)
    # output / P tiling: lane-dense slabs, biggest of 512/256/128 that divides
    if P_pad % 512 == 0:
        tp = 512
    elif P_pad % 256 == 0:
        tp = 256
    else:
        tp = 128

    g = jnp.transpose(grid.reshape(N, P, 2), (0, 2, 1)).astype(jnp.float32)
    if P_pad != P:
        # far-out-of-range coords -> all four weights are 0 -> output is 0 and
        # the padded lanes never trigger the has_corner path
        g = jnp.pad(g, ((0, 0), (0, 0), (0, P_pad - P)), constant_values=-2.0)

    # K (flattened H*W) tiling: keep x resident (single K step) whenever the
    # per-step (tk, tp) S/rel temporaries stay inside a conservative VMEM budget
    # (safe for the v5e 16 MiB scoped default; v6e/v7x have >= 32 MiB scoped).
    max_tile_elems = 512 * 1024                          # tk*tp cap (~6 MiB temporaries)
    tk_cap = max(512, max_tile_elems // tp)
    x_flat = x.reshape(N, C, K).astype(jnp.float32)
    if K <= tk_cap:
        tk, K_pad = K, K
    else:
        tk = tk_cap
        K_pad = _round_up(K, tk)
        x_flat = jnp.pad(x_flat, ((0, 0), (0, 0), (0, K_pad - K)))

    # bf16 at the dot boundary only where the MXU actually dominates (large C);
    # elementwise S build stays f32 (v5e VPU has no bf16, and it keeps accuracy).
    cast_dot_bf16 = C >= 128

    # crude VMEM estimate: double-buffered blocks + scratch + S/rel temporaries
    vmem_est = (2 * C * tk * 4 + 2 * 2 * tp * 4 + 2 * C * tp * 4
                + 5 * tp * 4 + 3 * tk * tp * 4)
    cp_kwargs = dict(dimension_semantics=("parallel", "parallel", "arbitrary"))
    if vmem_est > 14 * 1024 * 1024:
        cp_kwargs["vmem_limit_bytes"] = min(int(1.5 * vmem_est), 32 * 1024 * 1024)

    grid_dims = (N, P_pad // tp, K_pad // tk)

    out = pl.pallas_call(
        _make_grid_sample_kernel(H, W, tp, tk, cast_dot_bf16),
        out_shape=jax.ShapeDtypeStruct((N, C, P_pad), jnp.float32),
        grid_spec=pltpu.PrefetchScalarGridSpec(
            num_scalar_prefetch=0,
            grid=grid_dims,
            in_specs=[
                pl.BlockSpec((None, C, tk), lambda n, p, k: (n, 0, k)),
                pl.BlockSpec((None, 2, tp), lambda n, p, k: (n, 0, p)),
            ],
            out_specs=pl.BlockSpec((None, C, tp), lambda n, p, k: (n, 0, p)),
            scratch_shapes=[pltpu.VMEM((1, tp), jnp.float32)] * 4
                         + [pltpu.VMEM((1, tp), jnp.int32)],
        ),
        compiler_params=pltpu.CompilerParams(**cp_kwargs),
    )(x_flat, g)

    return out[:, :, :P].reshape(N, C, Ho, Wo)


def grid_sample_ref(x, grid):
    """Pure-JAX reference of F.grid_sample (bilinear, zeros, align_corners=False)."""
    N, C, H, W = x.shape
    _, Ho, Wo, _ = grid.shape
    gx = grid[..., 0]
    gy = grid[..., 1]
    ix = ((gx + 1.0) * W - 1.0) * 0.5
    iy = ((gy + 1.0) * H - 1.0) * 0.5
    ix0 = jnp.floor(ix)
    iy0 = jnp.floor(iy)
    ix1 = ix0 + 1.0
    iy1 = iy0 + 1.0
    wx1 = ix - ix0
    wx0 = 1.0 - wx1
    wy1 = iy - iy0
    wy0 = 1.0 - wy1

    xf = x.reshape(N, C, H * W)

    def gather(iy_f, ix_f):
        valid = ((ix_f >= 0) & (ix_f <= W - 1) &
                 (iy_f >= 0) & (iy_f <= H - 1)).astype(jnp.float32)
        ix_i = jnp.clip(ix_f, 0, W - 1).astype(jnp.int32)
        iy_i = jnp.clip(iy_f, 0, H - 1).astype(jnp.int32)
        idx = (iy_i * W + ix_i).reshape(N, 1, Ho * Wo)
        idx = jnp.broadcast_to(idx, (N, C, Ho * Wo))
        vals = jnp.take_along_axis(xf, idx, axis=2).reshape(N, C, Ho, Wo)
        return vals * valid[:, None, :, :]

    out = (gather(iy0, ix0) * (wy0 * wx0)[:, None] +
           gather(iy0, ix1) * (wy0 * wx1)[:, None] +
           gather(iy1, ix0) * (wy1 * wx0)[:, None] +
           gather(iy1, ix1) * (wy1 * wx1)[:, None])
    return out


if __name__ == "__main__":
    key = jax.random.PRNGKey(0)
    k1, k2 = jax.random.split(key)

    N, C, H, W = 2, 4, 16, 16
    Ho, Wo = 8, 8

    x = jax.random.normal(k1, (N, C, H, W), dtype=jnp.float32)
    # grid values drawn in [-2, 2) like the export script (tests zero padding).
    grid = jax.random.uniform(k2, (N, Ho, Wo, 2), dtype=jnp.float32,
                              minval=-2.0, maxval=2.0)

    out = grid_sample_pallas(x, grid)
    out = jax.block_until_ready(out)

    ref = grid_sample_ref(x, grid)
    assert out.shape == (N, C, Ho, Wo)
    assert jnp.max(jnp.abs(out - ref)) < 1e-4

    print("KERNEL_OK")
</pallas_src>

<mosaic_0001>
module attributes {stable_mosaic.version = 11 : i64} {
  func.func @kernel(%arg0: i32, %arg1: i32, %arg2: i32, %arg3: memref<1x4x256xf32, #tpu.memory_space<vmem>>, %arg4: memref<1x2x128xf32, #tpu.memory_space<vmem>>, %arg5: memref<1x4x128xf32, #tpu.memory_space<vmem>>, %arg6: memref<1x128xf32, #tpu.memory_space<vmem>>, %arg7: memref<1x128xf32, #tpu.memory_space<vmem>>, %arg8: memref<1x128xf32, #tpu.memory_space<vmem>>, %arg9: memref<1x128xf32, #tpu.memory_space<vmem>>, %arg10: memref<1x128xi32, #tpu.memory_space<vmem>>) attributes {dimension_semantics = [#tpu.dimension_semantics<parallel>, #tpu.dimension_semantics<parallel>, #tpu.dimension_semantics<arbitrary>], iteration_bounds = array<i64: 2, 1, 1>, scalar_prefetch = 0 : i64, scratch_operands = 5 : i64, tpu.core_type = #tpu.core_type<tc>, window_params = [{transform_indices = @transform_0, window_bounds = array<i64: 1, 4, 256>}, {transform_indices = @transform_1, window_bounds = array<i64: 1, 2, 128>}, {transform_indices = @transform_2, window_bounds = array<i64: 1, 4, 128>}]} {
    %c0_i32 = arith.constant 0 : i32
    %0 = arith.cmpi eq, %arg2, %c0_i32 : i32
    %1 = arith.extui %0 : i1 to i32
    %c0_i32_0 = arith.constant 0 : i32
    %2 = arith.cmpi ne, %1, %c0_i32_0 : i32
    scf.if %2 {
      %cst_7 = arith.constant 0.000000e+00 : f32
      %22 = vector.broadcast %cst_7 : f32 to vector<4x128xf32>
      %c0_8 = arith.constant 0 : index
      %c0_9 = arith.constant 0 : index
      %c0_10 = arith.constant 0 : index
      %23 = vector.load %arg5[%c0_8, %c0_9, %c0_10] : memref<1x4x128xf32, #tpu.memory_space<vmem>>, vector<1x4x128xf32>
      %24 = vector.shape_cast %23 : vector<1x4x128xf32> to vector<4x128xf32>
      %25 = vector.shape_cast %22 : vector<4x128xf32> to vector<1x4x128xf32>
      tpu.vector_store %arg5[%c0_8, %c0_9, %c0_10], %25 {strides = array<i32>} : memref<1x4x128xf32, #tpu.memory_space<vmem>>, vector<1x4x128xf32>,
      %c0_11 = arith.constant 0 : index
      %c0_12 = arith.constant 0 : index
      %c0_13 = arith.constant 0 : index
      %26 = vector.load %arg4[%c0_11, %c0_12, %c0_13] : memref<1x2x128xf32, #tpu.memory_space<vmem>>, vector<1x1x128xf32>
      %27 = vector.shape_cast %26 : vector<1x1x128xf32> to vector<1x128xf32>
      %c0_14 = arith.constant 0 : index
      %c1 = arith.constant 1 : index
      %c0_15 = arith.constant 0 : index
      %28 = vector.load %arg4[%c0_14, %c1, %c0_15] : memref<1x2x128xf32, #tpu.memory_space<vmem>>, vector<1x1x128xf32>
      %29 = vector.shape_cast %28 : vector<1x1x128xf32> to vector<1x128xf32>
      %cst_16 = arith.constant 1.000000e+00 : f32
      %30 = vector.broadcast %cst_16 : f32 to vector<1x128xf32>
      %31 = arith.addf %27, %30 : vector<1x128xf32>
      %cst_17 = arith.constant 1.600000e+01 : f32
      %32 = vector.broadcast %cst_17 : f32 to vector<1x128xf32>
      %33 = arith.mulf %31, %32 : vector<1x128xf32>
      %cst_18 = arith.constant 1.000000e+00 : f32
      %34 = vector.broadcast %cst_18 : f32 to vector<1x128xf32>
      %35 = arith.subf %33, %34 : vector<1x128xf32>
      %cst_19 = arith.constant 5.000000e-01 : f32
      %36 = vector.broadcast %cst_19 : f32 to vector<1x128xf32>
      %37 = arith.mulf %35, %36 : vector<1x128xf32>
      %cst_20 = arith.constant 1.000000e+00 : f32
      %38 = vector.broadcast %cst_20 : f32 to vector<1x128xf32>
      %39 = arith.addf %29, %38 : vector<1x128xf32>
      %cst_21 = arith.constant 1.600000e+01 : f32
      %40 = vector.broadcast %cst_21 : f32 to vector<1x128xf32>
      %41 = arith.mulf %39, %40 : vector<1x128xf32>
      %cst_22 = arith.constant 1.000000e+00 : f32
      %42 = vector.broadcast %cst_22 : f32 to vector<1x128xf32>
      %43 = arith.subf %41, %42 : vector<1x128xf32>
      %cst_23 = arith.constant 5.000000e-01 : f32
      %44 = vector.broadcast %cst_23 : f32 to vector<1x128xf32>
      %45 = arith.mulf %43, %44 : vector<1x128xf32>
      %46 = math.floor %37 : vector<1x128xf32>
      %47 = math.floor %45 : vector<1x128xf32>
      %48 = arith.subf %37, %46 : vector<1x128xf32>
      %49 = arith.subf %45, %47 : vector<1x128xf32>
      %50 = arith.fptosi %46 : vector<1x128xf32> to vector<1x128xi32>
      %51 = arith.fptosi %47 : vector<1x128xf32> to vector<1x128xi32>
      %c0_i32_24 = arith.constant 0 : i32
      %52 = vector.broadcast %c0_i32_24 : i32 to vector<1x128xi32>
      %53 = arith.cmpi sge, %51, %52 : vector<1x128xi32>
      %c16_i32 = arith.constant 16 : i32
      %54 = vector.broadcast %c16_i32 : i32 to vector<1x128xi32>
      %55 = arith.cmpi slt, %51, %54 : vector<1x128xi32>
      %56 = arith.andi %53, %55 : vector<1x128xi1>
      %cst_25 = arith.constant 1.000000e+00 : f32
      %57 = vector.broadcast %cst_25 : f32 to vector<1x128xf32>
      %58 = arith.subf %57, %49 : vector<1x128xf32>
      %cst_26 = arith.constant 0.000000e+00 : f32
      %59 = vector.broadcast %cst_26 : f32 to vector<1x128xf32>
      %60 = arith.select %56, %58, %59 : vector<1x128xi1>, vector<1x128xf32>
      %c0_27 = arith.constant 0 : index
      %c0_28 = arith.constant 0 : index
      %61 = vector.load %arg6[%c0_27, %c0_28] : memref<1x128xf32, #tpu.memory_space<vmem>>, vector<1x128xf32>
      tpu.vector_store %arg6[%c0_27, %c0_28], %60 {strides = array<i32>} : memref<1x128xf32, #tpu.memory_space<vmem>>, vector<1x128xf32>,
      %c-1_i32 = arith.constant -1 : i32
      %62 = vector.broadcast %c-1_i32 : i32 to vector<1x128xi32>
      %63 = arith.cmpi sge, %51, %62 : vector<1x128xi32>
      %c15_i32 = arith.constant 15 : i32
      %64 = vector.broadcast %c15_i32 : i32 to vector<1x128xi32>
      %65 = arith.cmpi slt, %51, %64 : vector<1x128xi32>
      %66 = arith.andi %63, %65 : vector<1x128xi1>
      %cst_29 = arith.constant 0.000000e+00 : f32
      %67 = vector.broadcast %cst_29 : f32 to vector<1x128xf32>
      %68 = arith.select %66, %49, %67 : vector<1x128xi1>, vector<1x128xf32>
      %c0_30 = arith.constant 0 : index
      %c0_31 = arith.constant 0 : index
      %69 = vector.load %arg7[%c0_30, %c0_31] : memref<1x128xf32, #tpu.memory_space<vmem>>, vector<1x128xf32>
      tpu.vector_store %arg7[%c0_30, %c0_31], %68 {strides = array<i32>} : memref<1x128xf32, #tpu.memory_space<vmem>>, vector<1x128xf32>,
      %c0_i32_32 = arith.constant 0 : i32
      %70 = vector.broadcast %c0_i32_32 : i32 to vector<1x128xi32>
      %71 = arith.cmpi sge, %50, %70 : vector<1x128xi32>
      %c16_i32_33 = arith.constant 16 : i32
      %72 = vector.broadcast %c16_i32_33 : i32 to vector<1x128xi32>
      %73 = arith.cmpi slt, %50, %72 : vector<1x128xi32>
      %74 = arith.andi %71, %73 : vector<1x128xi1>
      %cst_34 = arith.constant 1.000000e+00 : f32
      %75 = vector.broadcast %cst_34 : f32 to vector<1x128xf32>
      %76 = arith.subf %75, %48 : vector<1x128xf32>
      %cst_35 = arith.constant 0.000000e+00 : f32
      %77 = vector.broadcast %cst_35 : f32 to vector<1x128xf32>
      %78 = arith.select %74, %76, %77 : vector<1x128xi1>, vector<1x128xf32>
      %c0_36 = arith.constant 0 : index
      %c0_37 = arith.constant 0 : index
      %79 = vector.load %arg8[%c0_36, %c0_37] : memref<1x128xf32, #tpu.memory_space<vmem>>, vector<1x128xf32>
      tpu.vector_store %arg8[%c0_36, %c0_37], %78 {strides = array<i32>} : memref<1x128xf32, #tpu.memory_space<vmem>>, vector<1x128xf32>,
      %c-1_i32_38 = arith.constant -1 : i32
      %80 = vector.broadcast %c-1_i32_38 : i32 to vector<1x128xi32>
      %81 = arith.cmpi sge, %50, %80 : vector<1x128xi32>
      %c15_i32_39 = arith.constant 15 : i32
      %82 = vector.broadcast %c15_i32_39 : i32 to vector<1x128xi32>
      %83 = arith.cmpi slt, %50, %82 : vector<1x128xi32>
      %84 = arith.andi %81, %83 : vector<1x128xi1>
      %cst_40 = arith.constant 0.000000e+00 : f32
      %85 = vector.broadcast %cst_40 : f32 to vector<1x128xf32>
      %86 = arith.select %84, %48, %85 : vector<1x128xi1>, vector<1x128xf32>
      %c0_41 = arith.constant 0 : index
      %c0_42 = arith.constant 0 : index
      %87 = vector.load %arg9[%c0_41, %c0_42] : memref<1x128xf32, #tpu.memory_space<vmem>>, vector<1x128xf32>
      tpu.vector_store %arg9[%c0_41, %c0_42], %86 {strides = array<i32>} : memref<1x128xf32, #tpu.memory_space<vmem>>, vector<1x128xf32>,
      %c16_i32_43 = arith.constant 16 : i32
      %88 = vector.broadcast %c16_i32_43 : i32 to vector<1x128xi32>
      %89 = arith.muli %51, %88 : vector<1x128xi32>
      %90 = arith.addi %89, %50 : vector<1x128xi32>
      %c0_44 = arith.constant 0 : index
      %c0_45 = arith.constant 0 : index
      %91 = vector.load %arg10[%c0_44, %c0_45] : memref<1x128xi32, #tpu.memory_space<vmem>>, vector<1x128xi32>
      tpu.vector_store %arg10[%c0_44, %c0_45], %90 {strides = array<i32>} : memref<1x128xi32, #tpu.memory_space<vmem>>, vector<1x128xi32>,
    } else {
    }
    %c0 = arith.constant 0 : index
    %c0_1 = arith.constant 0 : index
    %3 = vector.load %arg10[%c0, %c0_1] : memref<1x128xi32, #tpu.memory_space<vmem>>, vector<1x128xi32>
    %c256_i32 = arith.constant 256 : i32
    %4 = arith.muli %arg2, %c256_i32 : i32
    %5 = vector.broadcast %4 : i32 to vector<1x128xi32>
    %6 = arith.subi %3, %5 : vector<1x128xi32>
    %c-18_i32 = arith.constant -18 : i32
    %7 = vector.broadcast %c-18_i32 : i32 to vector<1x128xi32>
    %8 = arith.cmpi sgt, %6, %7 : vector<1x128xi32>
    %c256_i32_2 = arith.constant 256 : i32
    %9 = vector.broadcast %c256_i32_2 : i32 to vector<1x128xi32>
    %10 = arith.cmpi slt, %6, %9 : vector<1x128xi32>
    %11 = arith.andi %8, %10 : vector<1x128xi1>
    %cst = arith.constant 1.000000e+00 : f32
    %cst_3 = arith.constant 0.000000e+00 : f32
    %12 = vector.broadcast %cst : f32 to vector<1x128xf32>
    %13 = vector.broadcast %cst_3 : f32 to vector<1x128xf32>
    %14 = arith.select %11, %12, %13 : vector<1x128xi1>, vector<1x128xf32>
    %15 = vector.shape_cast %14 : vector<1x128xf32> to vector<1x1x128xf32>
    %cst_4 = arith.constant dense<0xFF800000> : vector<1xf32>
    %16 = vector.multi_reduction <maximumf>, %15, %cst_4 [1, 2] : vector<1x1x128xf32> to vector<1xf32>
    %17 = vector.shape_cast %16 : vector<1xf32> to vector<1x1x1xf32>
    %18 = vector.extract %17[0, 0, 0] : f32 from vector<1x1x1xf32>
    %cst_5 = arith.constant 0.000000e+00 : f32
    %19 = arith.cmpf ogt, %18, %cst_5 : f32
    %20 = arith.extui %19 : i1 to i32
    %c0_i32_6 = arith.constant 0 : i32
    %21 = arith.cmpi ne, %20, %c0_i32_6 : i32
    scf.if %21 {
      %c0_7 = arith.constant 0 : index
      %c0_8 = arith.constant 0 : index
      %22 = vector.load %arg6[%c0_7, %c0_8] : memref<1x128xf32, #tpu.memory_space<vmem>>, vector<1x128xf32>
      %c0_9 = arith.constant 0 : index
      %c0_10 = arith.constant 0 : index
      %23 = vector.load %arg7[%c0_9, %c0_10] : memref<1x128xf32, #tpu.memory_space<vmem>>, vector<1x128xf32>
      %c0_11 = arith.constant 0 : index
      %c0_12 = arith.constant 0 : index
      %24 = vector.load %arg8[%c0_11, %c0_12] : memref<1x128xf32, #tpu.memory_space<vmem>>, vector<1x128xf32>
      %c0_13 = arith.constant 0 : index
      %c0_14 = arith.constant 0 : index
      %25 = vector.load %arg9[%c0_13, %c0_14] : memref<1x128xf32, #tpu.memory_space<vmem>>, vector<1x128xf32>
      %26 = tpu.iota {dimensions = array<i32: 0>} : vector<256x128xi32>
      %27 = vector.broadcast %6 : vector<1x128xi32> to vector<256x128xi32>
      %28 = arith.subi %26, %27 : vector<256x128xi32>
      %c0_i32_15 = arith.constant 0 : i32
      %29 = vector.broadcast %c0_i32_15 : i32 to vector<256x128xi32>
      %30 = arith.cmpi eq, %28, %29 : vector<256x128xi32>
      %c1_i32 = arith.constant 1 : i32
      %31 = vector.broadcast %c1_i32 : i32 to vector<256x128xi32>
      %32 = arith.cmpi eq, %28, %31 : vector<256x128xi32>
      %33 = arith.ori %30, %32 : vector<256x128xi1>
      %c16_i32 = arith.constant 16 : i32
      %34 = vector.broadcast %c16_i32 : i32 to vector<256x128xi32>
      %35 = arith.cmpi eq, %28, %34 : vector<256x128xi32>
      %c17_i32 = arith.constant 17 : i32
      %36 = vector.broadcast %c17_i32 : i32 to vector<256x128xi32>
      %37 = arith.cmpi eq, %28, %36 : vector<256x128xi32>
      %38 = arith.ori %35, %37 : vector<256x128xi1>
      %c0_i32_16 = arith.constant 0 : i32
      %39 = vector.broadcast %c0_i32_16 : i32 to vector<256x128xi32>
      %40 = arith.cmpi eq, %28, %39 : vector<256x128xi32>
      %c16_i32_17 = arith.constant 16 : i32
      %41 = vector.broadcast %c16_i32_17 : i32 to vector<256x128xi32>
      %42 = arith.cmpi eq, %28, %41 : vector<256x128xi32>
      %43 = arith.ori %40, %42 : vector<256x128xi1>
      %cst_18 = arith.constant 0.000000e+00 : f32
      %44 = vector.shape_cast %22 : vector<1x128xf32> to vector<1x128xf32>
      %45 = vector.broadcast %44 : vector<1x128xf32> to vector<256x128xf32>
      %46 = vector.broadcast %cst_18 : f32 to vector<256x128xf32>
      %47 = arith.select %33, %45, %46 : vector<256x128xi1>, vector<256x128xf32>
      %cst_19 = arith.constant 0.000000e+00 : f32
      %48 = vector.shape_cast %23 : vector<1x128xf32> to vector<1x128xf32>
      %49 = vector.broadcast %48 : vector<1x128xf32> to vector<256x128xf32>
      %50 = vector.broadcast %cst_19 : f32 to vector<256x128xf32>
      %51 = arith.select %38, %49, %50 : vector<256x128xi1>, vector<256x128xf32>
      %52 = arith.addf %47, %51 : vector<256x128xf32>
      %53 = vector.shape_cast %24 : vector<1x128xf32> to vector<1x128xf32>
      %54 = vector.broadcast %53 : vector<1x128xf32> to vector<256x128xf32>
      %55 = vector.shape_cast %25 : vector<1x128xf32> to vector<1x128xf32>
      %56 = vector.broadcast %55 : vector<1x128xf32> to vector<256x128xf32>
      %57 = arith.select %43, %54, %56 : vector<256x128xi1>, vector<256x128xf32>
      %58 = arith.mulf %52, %57 : vector<256x128xf32>
      %c0_20 = arith.constant 0 : index
      %c0_21 = arith.constant 0 : index
      %c0_22 = arith.constant 0 : index
      %59 = vector.load %arg3[%c0_20, %c0_21, %c0_22] : memref<1x4x256xf32, #tpu.memory_space<vmem>>, vector<1x4x256xf32>
      %60 = vector.shape_cast %59 : vector<1x4x256xf32> to vector<4x256xf32>
      %c0_23 = arith.constant 0 : index
      %c0_24 = arith.constant 0 : index
      %c0_25 = arith.constant 0 : index
      %61 = vector.load %arg5[%c0_23, %c0_24, %c0_25] : memref<1x4x128xf32, #tpu.memory_space<vmem>>, vector<1x4x128xf32>
      %62 = vector.shape_cast %61 : vector<1x4x128xf32> to vector<4x128xf32>
      %cst_26 = arith.constant dense<0.000000e+00> : vector<4x128xf32>
      %63 = tpu.matmul %60, %58, %cst_26 {dimension_numbers = #tpu.dot_dimension_numbers<[1], [0], [0], [1], [0, 0, 1, 1], [], []>} : vector<4x256xf32>, vector<256x128xf32>, vector<4x128xf32> -> vector<4x128xf32>
      %64 = arith.addf %62, %63 : vector<4x128xf32>
      %c0_27 = arith.constant 0 : index
      %c0_28 = arith.constant 0 : index
      %c0_29 = arith.constant 0 : index
      %65 = vector.load %arg5[%c0_27, %c0_28, %c0_29] : memref<1x4x128xf32, #tpu.memory_space<vmem>>, vector<1x4x128xf32>
      %66 = vector.shape_cast %65 : vector<1x4x128xf32> to vector<4x128xf32>
      %67 = vector.shape_cast %64 : vector<4x128xf32> to vector<1x4x128xf32>
      tpu.vector_store %arg5[%c0_27, %c0_28, %c0_29], %67 {strides = array<i32>} : memref<1x4x128xf32, #tpu.memory_space<vmem>>, vector<1x4x128xf32>,
    } else {
    }
    return
  }
  func.func @transform_0(%arg0: i32, %arg1: i32, %arg2: i32) -> (i32, i32, i32) {
    %c0_i32 = arith.constant 0 : i32
    %c0_i32_0 = arith.constant 0 : i32
    return %arg0, %c0_i32, %arg2 : i32, i32, i32
  }
  func.func @transform_1(%arg0: i32, %arg1: i32, %arg2: i32) -> (i32, i32, i32) {
    %c0_i32 = arith.constant 0 : i32
    %c0_i32_0 = arith.constant 0 : i32
    return %arg0, %c0_i32, %arg1 : i32, i32, i32
  }
  func.func @transform_2(%arg0: i32, %arg1: i32, %arg2: i32) -> (i32, i32, i32) {
    %c0_i32 = arith.constant 0 : i32
    %c0_i32_0 = arith.constant 0 : i32
    return %arg0, %c0_i32, %arg1 : i32, i32, i32
  }
}

</mosaic_0001>

<bundles_post_ra>
// kernel: tpu_custom_call.1
= control target key start
LH: loop header
LB: loop body
LE: loop exit
PB: predicated region body
PF: predicated region fallthrough
CT: control target
= control target key end

     0   :  { %7 = vsyncpa [#allocation8], 0  ;;  %s2170_s0 = inlined_call_operand.hbm [shape: f32[2,4,256], index: 0, kind: input, shape index: {}]   ;;  %s2171_s1 = inlined_call_operand.hbm [shape: f32[2,2,128], index: 1, kind: input, shape index: {}]   ;;  %s2172_s2 = inlined_call_operand.hbm [shape: f32[2,4,128], index: 2, kind: output, shape index: {}]  }
   0x1   :  { %9 = vsyncpa [#allocation8 + $0x1], 0 }
   0x2   :  { %10 = vsyncpa [#allocation11], 0 }
   0x3   :  { %12 = vsyncpa [#allocation11 + $0x1], 0 }
   0x4   :  { %13 = vsyncpa [#allocation9], 0 }
   0x5   :  { %15 = vsyncpa [#allocation9 + $0x1], 0  ;;  %s1310_s9 = smov 0   ;;  %s1312_s10 = smov 0  }
   0x6   :  { %s1314_s11 = smov 0   ;;  %s1316_s12 = smov 0  }
   0x7   :  { %s1318_s13 = smov 0   ;;  %s1320_s14 = smov 0  }
   0x8 LB: > { %s977_s15 = sadd.s32 4294967295, %s1289_s14   ;;  %s978_s16 = sadd.s32 4294967294, %s1289_s14   ;;  %s1289_s14 = sphi %s1320_s14, %s21_s14   ;;  %s1285_s13 = sphi %s1318_s13, %s2250_s13   ;;  %s1281_s12 = sphi %s1316_s12, %s2249_s12   ;;  %s1277_s11 = sphi %s1314_s11, %s2248_s11   ;;  %s1273_s10 = sphi %s1312_s10, %s2247_s10   ;;  %s1269_s9 = sphi %s1310_s9, %s2246_s9  }
   0x9   : > { %s40_s17 = sadd.s32 1, %s1285_s13  ;;  %s49_s18 = sadd.s32 1, %s1277_s11 }
   0xa   : > { %p42_p0 = scmp.ge.s32.totalorder %s40_s17, 2  ;;  %p56_p1 = scmp.ne.s32.totalorder %s1277_s11, %s1273_s10 }
   0xb   : > { %p57_p2 = scmp.eq.s32.totalorder %s1289_s14, 0  ;;  %p62_p3 = scmp.ne.s32.totalorder %s1273_s10, %s1269_s9 }
   0xc   : > { %s2252_s17 = smov (%p42_p0, %s40_s17), 0  ;;  %p63_p5 = scmp.eq.s32.totalorder %s977_s15, 0 }
   0xd   : > { %p1351_p4 = por %p57_p2, %p56_p1  ;;  %s44_s20 = ssub.s32 %s1285_s13, %s2252_s17 }
   0xe   : > { %p116_p6 = scmp.eq.s32.totalorder %s977_s15, 1  ;;  %p47_p7 = scmp.eq.s32.totalorder %s44_s20, 0 }
   0xf   : > { %p1357_p8 = por %p63_p5, %p62_p3  ;;  %p122_p10 = scmp.eq.s32.totalorder %s978_s16, 1 }
  0x10   : > { %p1361_p9 = por %p116_p6, %p56_p1  ;;  %p1091_p13 = scmp.lt.s32.totalorder %s1289_s14, 2 }
  0x11   : > { %s2176_s21 = scalar_select %p1357_p8, 1, 0 }
  0x12   : > { %s2177_s22 = scalar_select %p1361_p9, 1, 0 }
  0x13   : > { %s1366_s23 = scalar_select %p47_p7, %s1277_s11, %s49_s18  }
  0x14   : > { %p1368_p11 = por %p122_p10, %p62_p3  ;;  %s1375_s25 = sand.u32 1, %s1277_s11  }
  0x15   : > { %s981_s26 = sshll.u32 %s1375_s25, 3  ;;  %s1000_s27 = sshll.u32 %s1285_s13, 7 }
  0x16   : > { %s2178_s24 = scalar_select %p1368_p11, 1, 0 }
  0x17   : > { %s1382_s30 = scalar_lea.hbm %s2170_s0, %s1000_s27  ;;  %s146_s3 = scalar_lea.vmem [#allocation7], %s981_s26 }
  0x18   : > { %s156_s4 = sshll.u32 %s146_s3, 4  ;;  %p1388_p0 = pnand %p1091_p13, %p1351_p4  ;;  %s1384_s4 = int_to_ptr.vmem [resolvable:$true] %s156_s4 }
  0x19   : > { %s143_s6 = scalar_lea.sflag [#allocation8], %s1375_s25  ;;  %s1143_s7 = scalar_lea.hbm %s1382_s30, 128 }
  0x1a   : > { %p1144_p3 = scmp.ne.s32.totalorder %s1382_s30, %s1143_s7  ;;  %p1145_p5 = pneg %p1388_p0 }
  0x1b   : > { %s1148_s16 = scalar_lea.hbm %s2170_s0, 256  ;;  %p1149_p4 = scmp.lt.u32.totalorder %s1382_s30, %s2170_s0 }
  0x1c   : > { %p1146_p6 = pnand %p1145_p5, %p1144_p3  ;;  %p1150_p10 = scmp.lt.u32.totalorder %s1148_s16, %s1143_s7 }
  0x1d   : > { %p1152_p12 = scmp.lt.u32.totalorder %s1143_s7, %s1382_s30 }
  0x1e   : > { %p1147_p7 = pneg %p1146_p6  ;;  %p1151_p13 = por %p1150_p10, %p1149_p4 }
  0x20   : > { %p1153_p1 = por %p1152_p12, %p1151_p13 }
  0x22   : > { %p1154_p2 = pnand %p1153_p1, %p1147_p7 }
  0x24   : > { %1157 = shalt.err (!%p1154_p2)
}
  0x25   : > { %s1158_s20 = scalar_lea.vmem %s1384_s4, 128  ;;  %s1291_s26 = smov [#allocation7]  }
  0x26   : > { %p1159_p3 = scmp.ne.s32.totalorder %s1384_s4, %s1158_s20  ;;  %s1163_s27 = sshll.u32 %s1291_s26, 4  ;;  %s1164_s27 = int_to_ptr.vmem [resolvable:$false] %s1163_s27 }
  0x27   : > { %s1165_s28 = scalar_lea.vmem %s1164_s27, 256  ;;  %p1166_p9 = scmp.lt.s32.totalorder %s1384_s4, %s1164_s27 }
  0x28   : > { %p1161_p6 = pnand %p1159_p3, %p1145_p5  ;;  %p1167_p4 = scmp.lt.s32.totalorder %s1165_s28, %s1158_s20 }
  0x2a   : > { %p1162_p11 = pneg %p1161_p6  ;;  %p1168_p10 = por %p1167_p4, %p1166_p9 }
  0x2c   : > { %p1169_p12 = pnand %p1168_p10, %p1162_p11 }
  0x2e   : > { %1172 = shalt.err (!%p1169_p12)
}
  0x2f   : > { %1083 = dma.hbm_to_vmem [thread:$0]  (!%p1388_p0), %s1382_s30, 128, %s1384_s4, %s143_s6  }
  0x30   : > { %p2180_p1 = scmp.lt.s32.totalorder %s1289_s14, 3  ;;  %p2181_p2 = scmp.ge.s32.totalorder %s1289_s14, 1 }
  0x31   : > { %s984_s3 = sshll.u32 %s1375_s25, 1  ;;  %s985_s7 = sshll.u32 %s1285_s13, 5 }
  0x32   : > { %p1424_p7 = pnand %p2181_p2, %p2180_p1  ;;  %s1433_s16 = scalar_lea.hbm %s2171_s1, %s985_s7 }
  0x33   : > { %s167_s18 = scalar_lea.vmem [#allocation10], %s984_s3  ;;  %s164_s30 = scalar_lea.sflag [#allocation11], %s1375_s25 }
  0x34   : > { %s2182_s29 = scalar_select %p1424_p7, 1, 0 }
  0x35   : > { %s175_s19 = sshll.u32 %s167_s18, 4  ;;  %s1173_s4 = scalar_lea.hbm %s1433_s16, 32  ;;  %s176_s19 = int_to_ptr.vmem [resolvable:$true] %s175_s19 }
  0x36   : > { %p1174_p9 = scmp.ne.s32.totalorder %s1433_s16, %s1173_s4  ;;  %s1178_s26 = scalar_lea.hbm %s2171_s1, 64 }
  0x37   : > { %p1179_p3 = scmp.lt.u32.totalorder %s1433_s16, %s2171_s1  ;;  %p1180_p6 = scmp.lt.u32.totalorder %s1178_s26, %s1173_s4 }
  0x38   : > { %p1176_p11 = pnand %p1174_p9, %p1145_p5  ;;  %p1182_p10 = scmp.lt.u32.totalorder %s1173_s4, %s1433_s16 }
  0x39   : > { %p1181_p4 = por %p1180_p6, %p1179_p3 }
  0x3a   : > { %p1177_p13 = pneg %p1176_p11 }
  0x3b   : > { %p1183_p12 = por %p1182_p10, %p1181_p4 }
  0x3d   : > { %p1184_p1 = pnand %p1183_p12, %p1177_p13 }
  0x3f   : > { %1187 = shalt.err (!%p1184_p1)
}
  0x40   : > { %s1188_s25 = scalar_lea.vmem %s176_s19, 32  ;;  %s1292_s3 = smov [#allocation10]  }
  0x41   : > { %p1189_p2 = scmp.ne.s32.totalorder %s176_s19, %s1188_s25  ;;  %s1193_s7 = sshll.u32 %s1292_s3, 4  ;;  %s1194_s7 = int_to_ptr.vmem [resolvable:$false] %s1193_s7 }
  0x42   : > { %s1195_s8 = scalar_lea.vmem %s1194_s7, 64  ;;  %p1196_p8 = scmp.lt.s32.totalorder %s176_s19, %s1194_s7 }
  0x43   : > { %p1191_p9 = pnand %p1189_p2, %p1145_p5  ;;  %p1197_p7 = scmp.lt.s32.totalorder %s1195_s8, %s1188_s25 }
  0x45   : > { %p1192_p11 = pneg %p1191_p9  ;;  %p1198_p3 = por %p1197_p7, %p1196_p8 }
  0x47   : > { %p1199_p6 = pnand %p1198_p3, %p1192_p11 }
  0x49   : > { %1202 = shalt.err (!%p1199_p6)
}
  0x4a   : > { %1086 = dma.hbm_to_vmem [thread:$0]  (!%p1388_p0), %s1433_s16, 32, %s176_s19, %s164_s30  }
  0x4b   : > { %p2183_p13 = scmp.ne.s32.totalorder %s2182_s29, 0 }
  0x4c   : > { %s1458_s15 = sand.u32 (!%p2183_p13), 1, %s1273_s10   ;;  %p2184_p8 = scmp.ne.s32.totalorder (!%p2183_p13), %s2176_s21, 0 }
  0x4d   : > { %184 = sbr.rel (%p2183_p13) target bundleno = 684 (0x2ac), region = 28  ;;  %s987_s18 = sshll.u32 (!%p2183_p13), %s1458_s15, 3 }
  0x4e   : > { %s187_s4 = scalar_lea.sflag (!%p2183_p13), [#allocation8], %s1458_s15  ;;  %s1462_s6 = scalar_lea.vmem (!%p2183_p13), [#allocation7], %s987_s18 }
  0x54   : > { %1256 = dma.done.wait (%p2184_p8), %s187_s4, 128  }
  0x55   : > { %1258 = vsyncadd (%p2184_p8), %s187_s4, 4294967168  ;;  %s988_s5 = sshll.u32 %s1458_s15, 1  ;;  %s196_s29 = scalar_lea.sflag [#allocation11], %s1458_s15 }
  0x56   : > { %s199_s16 = scalar_lea.vmem [#allocation10], %s988_s5 }
  0x57   : > { %1260 = dma.done.wait (%p2184_p8), %s196_s29, 32  }
  0x58   : > { %1262 = vsyncadd (%p2184_p8), %s196_s29, 4294967264  ;;  %s989_s19 = sshll.u32 %s1458_s15, 2  ;;  %v1293_v0 = vmov 0.0   ;;  %v231_v1 = vld [vmem:[%s199_s16] sm:$0x1]  ;;  %vm280_vm14 = vcmask 1040384  }
  0x59   : > { %s1475_s30 = scalar_lea.vmem [#allocation12], %s989_s19  ;;  %v232_v2 = vld [vmem:[%s199_s16 + $0x1] sm:$0x1]  ;;  %v233_v3 = vadd.f32 1.0, %v231_v1 }
  0x5a   : > { %230 = vst [vmem:[%s1475_s30] sm:$0xf] %v1293_v0  ;;  %v237_v4 = vadd.f32 1.0, %v232_v2 }
  0x5b   : > { %v234_v5 = vmul.f32 16.0, %v233_v3 }
  0x5c   : > { %v238_v6 = vmul.f32 16.0, %v237_v4 }
  0x5d   : > { %v990_v7 = vadd.f32 -1.0, %v234_v5 }
  0x5e   : > { %v991_v8 = vadd.f32 -1.0, %v238_v6 }
  0x5f   : > { %v236_v9 = vmul.f32 0.5, %v990_v7 }
  0x60   : > { %v240_v10 = vmul.f32 0.5, %v991_v8 }
  0x61   : > { %v241_v11 = vfloor.f32 %v236_v9 }
  0x62   : > { %v242_v12 = vfloor.f32 %v240_v10 }
  0x63   : > { %v243_v13 = vsub.f32 %v236_v9, %v241_v11  ;;  %v1068_v15 = vtrunc.f32 %v241_v11 }
  0x64   : > { %v244_v14 = vsub.f32 %v240_v10, %v242_v12  ;;  %v1070_v16 = vtrunc.f32 %v242_v12 }
  0x65   : > { %v1069_v19 = vcvt.f32.s32 %v1068_v15  ;;  %v261_v20 = vsub.f32 1.0, %v243_v13 }
  0x66   : > { %v1071_v17 = vcvt.f32.s32 %v1070_v16  ;;  %v250_v18 = vsub.f32 1.0, %v244_v14 }
  0x67   : > { %vm258_vm5 = vcmp.ge.s32.totalorder %v1069_v19, 0  ;;  %vm259_vm6 = vcmp.lt.s32.totalorder %v1069_v19, 16  ;;  %vm264_vm7 = vcmp.ge.s32.totalorder %v1069_v19, 4294967295  ;;  %vm265_vm8 = vcmp.lt.s32.totalorder %v1069_v19, 15 }
  0x68   : > { %vm247_vm0 = vcmp.ge.s32.totalorder %v1071_v17, 0  ;;  %vm248_vm1 = vcmp.lt.s32.totalorder %v1071_v17, 16  ;;  %vm253_vm2 = vcmp.ge.s32.totalorder %v1071_v17, 4294967295  ;;  %vm254_vm3 = vcmp.lt.s32.totalorder %v1071_v17, 15  ;;  %vm260_vm10 = vmand %vm258_vm5, %vm259_vm6 }
  0x69   : > { %vm249_vm4 = vmand %vm247_vm0, %vm248_vm1  ;;  %v269_v22 = vmul.u32 16, %v1071_v17  ;;  %v262_v24 = vsel %vm260_vm10, %v261_v20, 0.0 }
  0x6a   : > { %v251_v21 = vsel %vm249_vm4, %v250_v18, 0.0  ;;  %vm255_vm9 = vmand %vm253_vm2, %vm254_vm3  ;;  %263 = vst [vmem:[#allocation4] sm:$0x1] %v262_v24 }
  0x6b   : > { %252 = vst [vmem:[#allocation2] sm:$0x1] %v251_v21  ;;  %v256_v23 = vsel %vm255_vm9, %v244_v14, 0.0  ;;  %vm266_vm11 = vmand %vm264_vm7, %vm265_vm8  ;;  %v270_v25 = vadd.s32 %v1069_v19, %v269_v22 }
  0x6c   : > { %257 = vst [vmem:[#allocation3] sm:$0x1] %v256_v23  ;;  %v267_v26 = vsel %vm266_vm11, %v243_v13, 0.0 }
  0x6d   : > { %268 = vst [vmem:[#allocation5] sm:$0x1] %v267_v26  ;;  %271 = vst [vmem:[#allocation6] sm:$0x1] %v270_v25 }
  0x74   : > { %v272_v27 = vld [vmem:[#allocation6] sm:$0x1] }
  0x75   : > { %vm276_vm12 = vcmp.gt.s32.totalorder %v272_v27, 4294967278  ;;  %vm277_vm13 = vcmp.lt.s32.totalorder %v272_v27, 256 }
  0x76   : > { %vm278_vm15 = vmand %vm276_vm12, %vm277_vm13 }
  0x77   : > { %v279_v28 = vsel %vm278_vm15, 1.0, %v1293_v0 }
  0x78   : > { %v281_v29 = vsel %vm280_vm14, %v279_v28, -inf }
  0x79   : > { %282 = vmax.xlane.f32.xlu0 %v281_v29 }
 0x106   : > { %v283_v30 = vpop.xlane.xlu0 %282 }
 0x107   : > { %v284_v31 = vrot.slane %v283_v30, 4 }
 0x109   : > { %v285_v32 = vmax.f32 %v283_v30, %v284_v31 }
 0x10b   : > { %v286_v33 = vrot.slane %v285_v32, 2 }
 0x10d   : > { %v287_v34 = vmax.f32 %v285_v32, %v286_v33 }
 0x10f   : > { %v288_v35 = vrot.slane %v287_v34, 1 }
 0x111   : > { %v289_v36 = vmax.f32 %v287_v34, %v288_v35 }
 0x113   : > { %1072 = vpush %v289_v36 }
 0x144   : > { %s1073_s21 = spop %1072 }
 0x145   : > { %p291_p0 = scmp.gt.f32.partialorder %s1073_s21, 0.0 }
 0x146   : > { %v299_v37 = vlaneseq (%p291_p0)  ;;  %v1479_v38 = vld [vmem:[%s1462_s6] sm:$0xff] (%p291_p0)  ;;  %v1493_v48 = vld [vmem:[#allocation2] ss:$0 sm:$0xff] (%p291_p0)  ;;  %v1500_v53 = vld [vmem:[#allocation3] ss:$0 sm:$0xff] (%p291_p0) }
 0x147   : > { %294 = sbr.rel (!%p291_p0) target bundleno = 659 (0x293), region = 44  ;;  %v779_v40 = vcombine.high (%p291_p0), %v1479_v38, %v1479_v38  ;;  %v1507_v55 = vld [vmem:[#allocation4] ss:$0 sm:$0xff] (%p291_p0)  ;;  %v1517_v58 = vld [vmem:[#allocation5] ss:$0 sm:$0xff] (%p291_p0) }
 0x148   : > { %v1481_v39 = vshrl.u32 (%p291_p0), %v299_v37, 7 }
 0x149   : > { %845 = vmatprep.mubr.f32.mxu0 (%p291_p0), %v779_v40 }
 0x14a   : > { %v316_v41 = vadd.s32 (%p291_p0), 128, %v1481_v39  ;;  %v317_v42 = vadd.s32 (%p291_p0), 136, %v1481_v39  ;;  %v334_v43 = vsub.s32 (%p291_p0), 0, %v1481_v39  ;;  %v301_v44 = vadd.s32 (%p291_p0), 8, %v1481_v39 }
 0x14b   : > { %v318_v51 = vadd.s32 (%p291_p0), 144, %v1481_v39  ;;  %v319_v52 = vadd.s32 (%p291_p0), 152, %v1481_v39  ;;  %v302_v61 = vadd.s32 (%p291_p0), 16, %v1481_v39  ;;  %v303_v62 = vadd.s32 (%p291_p0), 24, %v1481_v39 }
 0x14c   : > { %v1489_v45 = vrot.slane (%p291_p0), %v272_v27, %v334_v43  ;;  %v320_v14 = vadd.s32 (%p291_p0), 160, %v1481_v39  ;;  %v321_v27 = vadd.s32 (%p291_p0), 168, %v1481_v39  ;;  %v304_v28 = vadd.s32 (%p291_p0), 32, %v1481_v39 }
 0x14d   : > { %v305_v30 = vadd.s32 (%p291_p0), 40, %v1481_v39  ;;  %v323_v54 = vadd.s32 (%p291_p0), 184, %v1481_v39 }
 0x14e   : > { %v352_v46 = vsub.s32 %v316_v41, %v1489_v45  ;;  %v353_v47 = vsub.s32 %v317_v42, %v1489_v45  ;;  %v336_v49 = vsub.s32 %v1481_v39, %v1489_v45  ;;  %v337_v50 = vsub.s32 %v301_v44, %v1489_v45 }
 0x14f   : > { %v1524_v60 = vsub.s32 %v318_v51, %v1489_v45  ;;  %v1531_v0 = vsub.s32 %v319_v52, %v1489_v45  ;;  %v1560_v12 = vsub.s32 %v302_v61, %v1489_v45  ;;  %v1563_v13 = vsub.s32 %v303_v62, %v1489_v45 }
 0x150   : > { %vm384_vm0 = vcmp.eq.s32.totalorder %v352_v46, 0  ;;  %vm385_vm1 = vcmp.eq.s32.totalorder %v353_v47, 0  ;;  %vm416_vm2 = vcmp.eq.s32.totalorder %v352_v46, 1  ;;  %vm417_vm3 = vcmp.eq.s32.totalorder %v353_v47, 1 }
 0x151   : > { %vm1503_vm4 = vmor %vm384_vm0, %vm416_vm2  ;;  %vm480_vm5 = vcmp.eq.s32.totalorder %v352_v46, 16  ;;  %vm481_vm6 = vcmp.eq.s32.totalorder %v353_v47, 16  ;;  %vm512_vm7 = vcmp.eq.s32.totalorder %v352_v46, 17  ;;  %vm513_vm8 = vcmp.eq.s32.totalorder %v353_v47, 17 }
 0x152   : > { %vm1510_vm9 = vmor %vm385_vm1, %vm417_vm3  ;;  %v614_v57 = vsel %vm1503_vm4, %v1493_v48, 0.0  ;;  %vm368_vm12 = vcmp.eq.s32.totalorder %v336_v49, 0  ;;  %vm400_vm13 = vcmp.eq.s32.totalorder %v336_v49, 1  ;;  %vm369_vm15 = vcmp.eq.s32.totalorder %v337_v50, 0 }
 0x153   : > { %vm544_vm10 = vmor %vm480_vm5, %vm512_vm7  ;;  %v615_v59 = vsel %vm1510_vm9, %v1493_v48, 0.0  ;;  %vm401_vm2 = vcmp.eq.s32.totalorder %v337_v50, 1  ;;  %vm464_vm4 = vcmp.eq.s32.totalorder %v336_v49, 16  ;;  %vm496_vm7 = vcmp.eq.s32.totalorder %v336_v49, 17 }
 0x154   : > { %vm545_vm11 = vmor %vm481_vm6, %vm513_vm8  ;;  %v652_v63 = vsel %vm544_vm10, %v1500_v53, 0.0  ;;  %vm497_vm8 = vcmp.eq.s32.totalorder %v337_v50, 17  ;;  %vm386_vm10 = vcmp.eq.s32.totalorder %v1524_v60, 0  ;;  %v356_v37 = vsub.s32 %v320_v14, %v1489_v45 }
 0x155   : > { %vm576_vm14 = vmor %vm384_vm0, %vm480_vm5  ;;  %v653_v1 = vsel %vm545_vm11, %v1500_v53, 0.0  ;;  %v684_v2 = vadd.f32 %v652_v63, %v614_v57  ;;  %vm465_vm5 = vcmp.eq.s32.totalorder %v337_v50, 16  ;;  %vm418_vm11 = vcmp.eq.s32.totalorder %v1524_v60, 1 }
 0x156   : > { %vm577_vm3 = vmor %vm385_vm1, %vm481_vm6  ;;  %v685_v3 = vadd.f32 %v653_v1, %v615_v59  ;;  %v728_v4 = vsel %vm576_vm14, %v1507_v55, %v1517_v58  ;;  %vm387_vm14 = vcmp.eq.s32.totalorder %v1531_v0, 0  ;;  %v357_v43 = vsub.s32 %v321_v27, %v1489_v45 }
 0x157   : > { %v729_v5 = vsel %vm577_vm3, %v1507_v55, %v1517_v58  ;;  %v760_v6 = vmul.f32 %v728_v4, %v684_v2  ;;  %vm1543_vm0 = vmor %vm368_vm12, %vm400_vm13  ;;  %v322_v49 = vadd.s32 176, %v1481_v39  ;;  %v1660_v51 = vsub.s32 %v304_v28, %v1489_v45 }
 0x158   : > { %v761_v8 = vmul.f32 %v729_v5, %v685_v3  ;;  %vm1548_vm1 = vmor %vm369_vm15, %vm401_vm2  ;;  %v598_v10 = vsel %vm1543_vm0, %v1493_v48, 0.0  ;;  %vm419_vm2 = vcmp.eq.s32.totalorder %v1531_v0, 1  ;;  %vm514_vm0 = vcmp.eq.s32.totalorder %v1524_v60, 17 }
 0x159   : > { %vm528_vm6 = vmor %vm464_vm4, %vm496_vm7  ;;  %v599_v11 = vsel %vm1548_vm1, %v1493_v48, 0.0  ;;  %vm482_vm7 = vcmp.eq.s32.totalorder %v1524_v60, 16  ;;  %vm370_vm1 = vcmp.eq.s32.totalorder %v1560_v12, 0  ;;  %v1663_v52 = vsub.s32 %v305_v30, %v1489_v45 }
 0x15a   : > { %v1036_v15 = vpack.c.bf16 %v761_v8, %v760_v6  ;;  %vm529_vm9 = vmor %vm465_vm5, %vm497_vm8  ;;  %v636_v16 = vsel %vm528_vm6, %v1500_v53, 0.0  ;;  %vm371_vm6 = vcmp.eq.s32.totalorder %v1563_v13, 0  ;;  %v306_v5 = vadd.s32 48, %v1481_v39 }
 0x15b   : > { %vm560_vm13 = vmor %vm368_vm12, %vm464_vm4  ;;  %v637_v17 = vsel %vm529_vm9, %v1500_v53, 0.0  ;;  %v668_v18 = vadd.f32 %v636_v16, %v598_v10  ;;  %vm515_vm4 = vcmp.eq.s32.totalorder %v1531_v0, 17 }
 0x15c   : > { %1037 = vmatprep.subr.bf16.mxu0 %v1036_v15  ;;  %vm561_vm3 = vmor %vm369_vm15, %vm465_vm5  ;;  %v669_v19 = vadd.f32 %v637_v17, %v599_v11  ;;  %v712_v20 = vsel %vm560_vm13, %v1507_v55, %v1517_v58  ;;  %vm483_vm15 = vcmp.eq.s32.totalorder %v1531_v0, 16  ;;  %vm403_vm13 = vcmp.eq.s32.totalorder %v1563_v13, 1 }
 0x15d   : > { %v713_v21 = vsel %vm561_vm3, %v1507_v55, %v1517_v58  ;;  %v744_v22 = vmul.f32 %v712_v20, %v668_v18  ;;  %vm1585_vm12 = vmor %vm386_vm10, %vm418_vm11  ;;  %vm402_vm11 = vcmp.eq.s32.totalorder %v1560_v12, 1  ;;  %vm466_vm3 = vcmp.eq.s32.totalorder %v1560_v12, 16 }
 0x15e   : > { %v745_v24 = vmul.f32 %v713_v21, %v669_v19  ;;  %vm1593_vm5 = vmor %vm387_vm14, %vm419_vm2  ;;  %v616_v26 = vsel %vm1585_vm12, %v1493_v48, 0.0  ;;  %v358_v11 = vsub.s32 %v322_v49, %v1489_v45  ;;  %v307_v18 = vadd.s32 56, %v1481_v39 }
 0x15f   : > { %vm546_vm8 = vmor %vm482_vm7, %vm514_vm0  ;;  %v617_v29 = vsel %vm1593_vm5, %v1493_v48, 0.0  ;;  %vm467_vm0 = vcmp.eq.s32.totalorder %v1563_v13, 16  ;;  %v1747_v23 = vsub.s32 %v306_v5, %v1489_v45 }
 0x160   : > { %v1038_v31 = vpack.c.bf16 %v745_v24, %v744_v22  ;;  %vm547_vm9 = vmor %vm483_vm15, %vm515_vm4  ;;  %v654_v32 = vsel %vm546_vm8, %v1500_v53, 0.0  ;;  %vm498_vm4 = vcmp.eq.s32.totalorder %v1560_v12, 17  ;;  %vm388_vm8 = vcmp.eq.s32.totalorder %v356_v37, 0 }
 0x161   : > { %vm578_vm2 = vmor %vm386_vm10, %vm482_vm7  ;;  %v655_v33 = vsel %vm547_vm9, %v1500_v53, 0.0  ;;  %v686_v34 = vadd.f32 %v654_v32, %v616_v26  ;;  %vm420_vm9 = vcmp.eq.s32.totalorder %v356_v37, 1  ;;  %v359_v12 = vsub.s32 %v323_v54, %v1489_v45 }
 0x162   : > { %1039 = vmatpush3.bf16.msra.mxu0 %v1038_v31  ;;  %vm579_vm12 = vmor %vm387_vm14, %vm483_vm15  ;;  %v687_v35 = vadd.f32 %v655_v33, %v617_v29  ;;  %v730_v36 = vsel %vm578_vm2, %v1507_v55, %v1517_v58  ;;  %vm499_vm14 = vcmp.eq.s32.totalorder %v1563_v13, 17  ;;  %vm421_vm2 = vcmp.eq.s32.totalorder %v357_v43, 1 }
 0x163   : > { %v731_v40 = vsel %vm579_vm12, %v1507_v55, %v1517_v58  ;;  %v762_v41 = vmul.f32 %v730_v36, %v686_v34  ;;  %vm1636_vm10 = vmor %vm370_vm1, %vm402_vm11  ;;  %v1758_v28 = vsub.s32 %v307_v18, %v1489_v45  ;;  %v324_v34 = vadd.s32 192, %v1481_v39 }
 0x164   : > { %v763_v44 = vmul.f32 %v731_v40, %v687_v35  ;;  %vm1646_vm7 = vmor %vm371_vm6, %vm403_vm13  ;;  %v600_v47 = vsel %vm1636_vm10, %v1493_v48, 0.0  ;;  %vm389_vm13 = vcmp.eq.s32.totalorder %v357_v43, 0  ;;  %vm516_vm10 = vcmp.eq.s32.totalorder %v356_v37, 17 }
 0x165   : > { %vm530_vm15 = vmor %vm466_vm3, %vm498_vm4  ;;  %v601_v50 = vsel %vm1646_vm7, %v1493_v48, 0.0  ;;  %vm484_vm4 = vcmp.eq.s32.totalorder %v356_v37, 16  ;;  %vm372_vm7 = vcmp.eq.s32.totalorder %v1660_v51, 0  ;;  %v325_v40 = vadd.s32 200, %v1481_v39 }
 0x166   : > { %v1040_v56 = vpack.c.bf16 %v763_v44, %v762_v41  ;;  %vm531_vm5 = vmor %vm467_vm0, %vm499_vm14  ;;  %v638_v57 = vsel %vm530_vm15, %v1500_v53, 0.0  ;;  %vm517_vm14 = vcmp.eq.s32.totalorder %v357_v43, 17  ;;  %vm373_vm15 = vcmp.eq.s32.totalorder %v1663_v52, 0 }
 0x167   : > { %vm562_vm11 = vmor %vm370_vm1, %vm466_vm3  ;;  %v639_v59 = vsel %vm531_vm5, %v1500_v53, 0.0  ;;  %v670_v60 = vadd.f32 %v638_v57, %v600_v47  ;;  %vm485_vm3 = vcmp.eq.s32.totalorder %v357_v43, 16  ;;  %vm404_vm5 = vcmp.eq.s32.totalorder %v1660_v51, 1 }
 0x168   : > { %1041 = vmatprep.subr.bf16.mxu0 %v1040_v56  ;;  %vm563_vm12 = vmor %vm371_vm6, %vm467_vm0  ;;  %v671_v61 = vadd.f32 %v639_v59, %v601_v50  ;;  %v714_v62 = vsel %vm562_vm11, %v1507_v55, %v1517_v58  ;;  %vm405_vm11 = vcmp.eq.s32.totalorder %v1663_v52, 1  ;;  %v308_v44 = vadd.s32 64, %v1481_v39 }
 0x169   : > { %v715_v63 = vsel %vm563_vm12, %v1507_v55, %v1517_v58  ;;  %v746_v0 = vmul.f32 %v714_v62, %v670_v60  ;;  %vm1683_vm1 = vmor %vm388_vm8, %vm420_vm9  ;;  %v360_v49 = vsub.s32 %v324_v34, %v1489_v45  ;;  %v309_v50 = vadd.s32 72, %v1481_v39 }
 0x16a   : > { %v747_v2 = vmul.f32 %v715_v63, %v671_v61  ;;  %vm1688_vm6 = vmor %vm389_vm13, %vm421_vm2  ;;  %v618_v4 = vsel %vm1683_vm1, %v1493_v48, 0.0  ;;  %vm468_vm2 = vcmp.eq.s32.totalorder %v1660_v51, 16  ;;  %vm469_vm1 = vcmp.eq.s32.totalorder %v1663_v52, 16 }
 0x16b   : > { %vm548_vm0 = vmor %vm484_vm4, %vm516_vm10  ;;  %v619_v6 = vsel %vm1688_vm6, %v1493_v48, 0.0  ;;  %vm390_vm6 = vcmp.eq.s32.totalorder %v358_v11, 0  ;;  %v361_v54 = vsub.s32 %v325_v40, %v1489_v45  ;;  %v326_v63 = vadd.s32 208, %v1481_v39 }
 0x16c   : > { %v1042_v7 = vpack.c.bf16 %v747_v2, %v746_v0  ;;  %vm549_vm9 = vmor %vm485_vm3, %vm517_vm14  ;;  %v656_v8 = vsel %vm548_vm0, %v1500_v53, 0.0  ;;  %vm500_vm14 = vcmp.eq.s32.totalorder %v1660_v51, 17  ;;  %vm391_vm0 = vcmp.eq.s32.totalorder %v359_v12, 0 }
 0x16d   : > { %vm580_vm12 = vmor %vm388_vm8, %vm484_vm4  ;;  %v657_v9 = vsel %vm549_vm9, %v1500_v53, 0.0  ;;  %v688_v10 = vadd.f32 %v656_v8, %v618_v4  ;;  %vm422_vm9 = vcmp.eq.s32.totalorder %v358_v11, 1  ;;  %v1838_v1 = vsub.s32 %v308_v44, %v1489_v45 }
 0x16e   : > { %1043 = vmatpush3.bf16.msra.mxu0 %v1042_v7  ;;  %vm581_vm10 = vmor %vm389_vm13, %vm485_vm3  ;;  %v689_v13 = vadd.f32 %v657_v9, %v619_v6  ;;  %v732_v14 = vsel %vm580_vm12, %v1507_v55, %v1517_v58  ;;  %vm501_vm13 = vcmp.eq.s32.totalorder %v1663_v52, 17  ;;  %v1841_v2 = vsub.s32 %v309_v50, %v1489_v45 }
 0x16f   : > { %v733_v15 = vsel %vm581_vm10, %v1507_v55, %v1517_v58  ;;  %v764_v16 = vmul.f32 %v732_v14, %v688_v10  ;;  %vm1724_vm8 = vmor %vm372_vm7, %vm404_vm5  ;;  %vm486_vm10 = vcmp.eq.s32.totalorder %v358_v11, 16  ;;  %v329_v50 = vadd.s32 232, %v1481_v39 }
 0x170   : > { %v765_v19 = vmul.f32 %v733_v15, %v689_v13  ;;  %vm1734_vm4 = vmor %vm373_vm15, %vm405_vm11  ;;  %v602_v21 = vsel %vm1724_vm8, %v1493_v48, 0.0  ;;  %vm423_vm11 = vcmp.eq.s32.totalorder %v359_v12, 1  ;;  %vm487_vm8 = vcmp.eq.s32.totalorder %v359_v12, 16 }
 0x171   : > { %vm532_vm3 = vmor %vm468_vm2, %vm500_vm14  ;;  %v603_v22 = vsel %vm1734_vm4, %v1493_v48, 0.0 }
 0x172   : > { %v1044_v24 = vpack.c.bf16 %v765_v19, %v764_v16  ;;  %vm533_vm5 = vmor %vm469_vm1, %vm501_vm13  ;;  %v640_v25 = vsel %vm532_vm3, %v1500_v53, 0.0  ;;  %vm518_vm13 = vcmp.eq.s32.totalorder %v358_v11, 17  ;;  %vm375_vm3 = vcmp.eq.s32.totalorder %v1758_v28, 0 }
 0x173   : > { %vm564_vm12 = vmor %vm372_vm7, %vm468_vm2  ;;  %v641_v26 = vsel %vm533_vm5, %v1500_v53, 0.0  ;;  %v672_v27 = vadd.f32 %v640_v25, %v602_v21  ;;  %vm519_vm2 = vcmp.eq.s32.totalorder %v359_v12, 17  ;;  %vm406_vm5 = vcmp.eq.s32.totalorder %v1747_v23, 1 }
 0x174   : > { %1045 = vmatprep.subr.bf16.mxu0 %v1044_v24  ;;  %vm565_vm14 = vmor %vm373_vm15, %vm469_vm1  ;;  %v673_v29 = vadd.f32 %v641_v26, %v603_v22  ;;  %v716_v30 = vsel %vm564_vm12, %v1507_v55, %v1517_v58  ;;  %vm374_vm1 = vcmp.eq.s32.totalorder %v1747_v23, 0  ;;  %vm407_vm12 = vcmp.eq.s32.totalorder %v1758_v28, 1 }
 0x175   : > { %v717_v31 = vsel %vm565_vm14, %v1507_v55, %v1517_v58  ;;  %v748_v32 = vmul.f32 %v716_v30, %v672_v27  ;;  %vm1770_vm7 = vmor %vm390_vm6, %vm422_vm9  ;;  %vm470_vm9 = vcmp.eq.s32.totalorder %v1747_v23, 16  ;;  %v327_v12 = vadd.s32 216, %v1481_v39 }
 0x176   : > { %v749_v35 = vmul.f32 %v717_v31, %v673_v29  ;;  %vm1777_vm15 = vmor %vm391_vm0, %vm423_vm11  ;;  %v620_v37 = vsel %vm1770_vm7, %v1493_v48, 0.0  ;;  %vm502_vm7 = vcmp.eq.s32.totalorder %v1747_v23, 17  ;;  %v362_v19 = vsub.s32 %v326_v63, %v1489_v45 }
 0x177   : > { %vm550_vm4 = vmor %vm486_vm10, %vm518_vm13  ;;  %v621_v41 = vsel %vm1777_vm15, %v1493_v48, 0.0  ;;  %vm392_vm15 = vcmp.eq.s32.totalorder %v360_v49, 0  ;;  %v363_v22 = vsub.s32 %v327_v12, %v1489_v45  ;;  %v311_v29 = vadd.s32 88, %v1481_v39 }
 0x178   : > { %v1046_v42 = vpack.c.bf16 %v749_v35, %v748_v32  ;;  %vm551_vm11 = vmor %vm487_vm8, %vm519_vm2  ;;  %v658_v43 = vsel %vm550_vm4, %v1500_v53, 0.0  ;;  %v365_v63 = vsub.s32 %v329_v50, %v1489_v45 }
 0x179   : > { %vm582_vm14 = vmor %vm390_vm6, %vm486_vm10  ;;  %v659_v46 = vsel %vm551_vm11, %v1500_v53, 0.0  ;;  %v690_v47 = vadd.f32 %v658_v43, %v620_v37  ;;  %vm503_vm10 = vcmp.eq.s32.totalorder %v1758_v28, 17  ;;  %vm424_vm11 = vcmp.eq.s32.totalorder %v360_v49, 1 }
 0x17a   : > { %1047 = vmatpush3.bf16.msra.mxu0 %v1046_v42  ;;  %vm583_vm13 = vmor %vm391_vm0, %vm487_vm8  ;;  %v691_v51 = vadd.f32 %v659_v46, %v621_v41  ;;  %v734_v52 = vsel %vm582_vm14, %v1507_v55, %v1517_v58  ;;  %vm471_vm0 = vcmp.eq.s32.totalorder %v1758_v28, 16  ;;  %vm425_vm14 = vcmp.eq.s32.totalorder %v361_v54, 1 }
 0x17b   : > { %v735_v56 = vsel %vm583_vm13, %v1507_v55, %v1517_v58  ;;  %v766_v57 = vmul.f32 %v734_v52, %v690_v47  ;;  %vm1814_vm6 = vmor %vm374_vm1, %vm406_vm5  ;;  %vm393_vm5 = vcmp.eq.s32.totalorder %v361_v54, 0  ;;  %vm488_vm13 = vcmp.eq.s32.totalorder %v360_v49, 16 }
 0x17c   : > { %v767_v60 = vmul.f32 %v735_v56, %v691_v51  ;;  %vm1824_vm8 = vmor %vm375_vm3, %vm407_vm12  ;;  %v604_v62 = vsel %vm1814_vm6, %v1493_v48, 0.0  ;;  %vm489_vm6 = vcmp.eq.s32.totalorder %v361_v54, 16  ;;  %v310_v28 = vadd.s32 80, %v1481_v39 }
 0x17d   : > { %vm534_vm2 = vmor %vm470_vm9, %vm502_vm7  ;;  %v605_v0 = vsel %vm1824_vm8, %v1493_v48, 0.0  ;;  %v347_v41 = vsub.s32 %v311_v29, %v1489_v45  ;;  %v315_v47 = vadd.s32 120, %v1481_v39 }
 0x17e   : > { %v1048_v3 = vpack.c.bf16 %v767_v60, %v766_v57  ;;  %vm535_vm4 = vmor %vm471_vm0, %vm503_vm10  ;;  %v642_v4 = vsel %vm534_vm2, %v1500_v53, 0.0  ;;  %vm520_vm10 = vcmp.eq.s32.totalorder %v360_v49, 17  ;;  %vm377_vm2 = vcmp.eq.s32.totalorder %v1841_v2, 0 }
 0x17f   : > { %vm566_vm12 = vmor %vm374_vm1, %vm470_vm9  ;;  %v643_v5 = vsel %vm535_vm4, %v1500_v53, 0.0  ;;  %v674_v6 = vadd.f32 %v642_v4, %v604_v62  ;;  %vm521_vm9 = vcmp.eq.s32.totalorder %v361_v54, 17  ;;  %vm408_vm4 = vcmp.eq.s32.totalorder %v1838_v1, 1 }
 0x180   : > { %1049 = vmatprep.subr.bf16.mxu0 %v1048_v3  ;;  %vm567_vm7 = vmor %vm375_vm3, %vm471_vm0  ;;  %v675_v7 = vadd.f32 %v643_v5, %v605_v0  ;;  %v718_v8 = vsel %vm566_vm12, %v1507_v55, %v1517_v58  ;;  %vm376_vm0 = vcmp.eq.s32.totalorder %v1838_v1, 0  ;;  %v346_v40 = vsub.s32 %v310_v28, %v1489_v45 }
 0x181   : > { %v719_v9 = vsel %vm567_vm7, %v1507_v55, %v1517_v58  ;;  %v750_v10 = vmul.f32 %v718_v8, %v674_v6  ;;  %vm1860_vm1 = vmor %vm392_vm15, %vm424_vm11  ;;  %vm409_vm11 = vcmp.eq.s32.totalorder %v1841_v2, 1  ;;  %v328_v49 = vadd.s32 224, %v1481_v39 }
 0x182   : > { %v751_v13 = vmul.f32 %v719_v9, %v675_v7  ;;  %vm1866_vm3 = vmor %vm393_vm5, %vm425_vm14  ;;  %v622_v15 = vsel %vm1860_vm1, %v1493_v48, 0.0  ;;  %vm472_vm14 = vcmp.eq.s32.totalorder %v1838_v1, 16  ;;  %v312_v5 = vadd.s32 96, %v1481_v39 }
 0x183   : > { %vm552_vm8 = vmor %vm488_vm13, %vm520_vm10  ;;  %v623_v16 = vsel %vm1866_vm3, %v1493_v48, 0.0  ;;  %vm473_vm10 = vcmp.eq.s32.totalorder %v1841_v2, 16  ;;  %vm505_vm3 = vcmp.eq.s32.totalorder %v1841_v2, 17  ;;  %v364_v62 = vsub.s32 %v328_v49, %v1489_v45 }
 0x184   : > { %v1050_v17 = vpack.c.bf16 %v751_v13, %v750_v10  ;;  %vm553_vm12 = vmor %vm489_vm6, %vm521_vm9  ;;  %v660_v18 = vsel %vm552_vm8, %v1500_v53, 0.0  ;;  %vm504_vm9 = vcmp.eq.s32.totalorder %v1838_v1, 17  ;;  %vm395_vm8 = vcmp.eq.s32.totalorder %v363_v22, 0 }
 0x185   : > { %vm584_vm7 = vmor %vm392_vm15, %vm488_vm13  ;;  %v661_v20 = vsel %vm553_vm12, %v1500_v53, 0.0  ;;  %v692_v21 = vadd.f32 %v660_v18, %v622_v15  ;;  %vm394_vm13 = vcmp.eq.s32.totalorder %v362_v19, 0  ;;  %vm490_vm12 = vcmp.eq.s32.totalorder %v362_v19, 16 }
 0x186   : > { %1051 = vmatpush3.bf16.msra.mxu0 %v1050_v17  ;;  %vm585_vm1 = vmor %vm393_vm5, %vm489_vm6  ;;  %v693_v23 = vadd.f32 %v661_v20, %v623_v16  ;;  %v736_v24 = vsel %vm584_vm7, %v1507_v55, %v1517_v58  ;;  %vm427_vm7 = vcmp.eq.s32.totalorder %v363_v22, 1  ;;  %v313_v9 = vadd.s32 104, %v1481_v39 }
 0x187   : > { %v737_v25 = vsel %vm585_vm1, %v1507_v55, %v1517_v58  ;;  %v768_v26 = vmul.f32 %v736_v24, %v692_v21  ;;  %vm1902_vm15 = vmor %vm376_vm0, %vm408_vm4  ;;  %vm426_vm4 = vcmp.eq.s32.totalorder %v362_v19, 1  ;;  %vm491_vm1 = vcmp.eq.s32.totalorder %v363_v22, 16 }
 0x188   : > { %v769_v30 = vmul.f32 %v737_v25, %v693_v23  ;;  %vm1912_vm5 = vmor %vm377_vm2, %vm409_vm11  ;;  %v606_v32 = vsel %vm1902_vm15, %v1493_v48, 0.0  ;;  %vm522_vm15 = vcmp.eq.s32.totalorder %v362_v19, 17  ;;  %v348_v15 = vsub.s32 %v312_v5, %v1489_v45 }
 0x189   : > { %vm536_vm6 = vmor %vm472_vm14, %vm504_vm9  ;;  %v607_v33 = vsel %vm1912_vm5, %v1493_v48, 0.0  ;;  %vm523_vm5 = vcmp.eq.s32.totalorder %v363_v22, 17  ;;  %v349_v18 = vsub.s32 %v313_v9, %v1489_v45  ;;  %v330_v22 = vadd.s32 240, %v1481_v39 }
 0x18a   : > { %v1052_v34 = vpack.c.bf16 %v769_v30, %v768_v26  ;;  %vm537_vm11 = vmor %vm473_vm10, %vm505_vm3  ;;  %v644_v35 = vsel %vm536_vm6, %v1500_v53, 0.0  ;;  %vm379_vm6 = vcmp.eq.s32.totalorder %v347_v41, 0  ;;  %v331_v26 = vadd.s32 248, %v1481_v39 }
 0x18b   : > { %vm568_vm9 = vmor %vm376_vm0, %vm472_vm14  ;;  %v645_v36 = vsel %vm537_vm11, %v1500_v53, 0.0  ;;  %v676_v37 = vadd.f32 %v644_v35, %v606_v32  ;;  %v366_v32 = vsub.s32 %v330_v22, %v1489_v45 }
 0x18c   : > { %1053 = vmatprep.subr.bf16.mxu0 %v1052_v34  ;;  %vm569_vm3 = vmor %vm377_vm2, %vm473_vm10  ;;  %v677_v42 = vadd.f32 %v645_v36, %v607_v33  ;;  %v720_v43 = vsel %vm568_vm9, %v1507_v55, %v1517_v58  ;;  %vm378_vm10 = vcmp.eq.s32.totalorder %v346_v40, 0  ;;  %vm474_vm9 = vcmp.eq.s32.totalorder %v346_v40, 16 }
 0x18d   : > { %v721_v44 = vsel %vm569_vm3, %v1507_v55, %v1517_v58  ;;  %v752_v46 = vmul.f32 %v720_v43, %v676_v37  ;;  %vm1946_vm0 = vmor %vm394_vm13, %vm426_vm4  ;;  %vm410_vm4 = vcmp.eq.s32.totalorder %v346_v40, 1  ;;  %v367_v35 = vsub.s32 %v331_v26, %v1489_v45 }
 0x18e   : > { %v753_v51 = vmul.f32 %v721_v44, %v677_v42  ;;  %vm1954_vm2 = vmor %vm395_vm8, %vm427_vm7  ;;  %v624_v54 = vsel %vm1946_vm0, %v1493_v48, 0.0  ;;  %vm411_vm7 = vcmp.eq.s32.totalorder %v347_v41, 1  ;;  %vm506_vm0 = vcmp.eq.s32.totalorder %v346_v40, 17 }
 0x18f   : > { %vm554_vm14 = vmor %vm490_vm12, %vm522_vm15  ;;  %v625_v56 = vsel %vm1954_vm2, %v1493_v48, 0.0  ;;  %vm396_vm2 = vcmp.eq.s32.totalorder %v364_v62, 0  ;;  %v314_v44 = vadd.s32 112, %v1481_v39 }
 0x190   : > { %v1054_v57 = vpack.c.bf16 %v753_v51, %v752_v46  ;;  %vm555_vm11 = vmor %vm491_vm1, %vm523_vm5  ;;  %v662_v59 = vsel %vm554_vm14, %v1500_v53, 0.0  ;;  %vm475_vm5 = vcmp.eq.s32.totalorder %v347_v41, 16  ;;  %vm397_vm14 = vcmp.eq.s32.totalorder %v365_v63, 0 }
 0x191   : > { %vm586_vm3 = vmor %vm394_vm13, %vm490_vm12  ;;  %v663_v60 = vsel %vm555_vm11, %v1500_v53, 0.0  ;;  %v694_v61 = vadd.f32 %v662_v59, %v624_v54  ;;  %vm507_vm12 = vcmp.eq.s32.totalorder %v347_v41, 17 }
 0x192   : > { %1055 = vmatpush3.bf16.msra.mxu0 %v1054_v57  ;;  %vm587_vm15 = vmor %vm395_vm8, %vm491_vm1  ;;  %v695_v0 = vadd.f32 %v663_v60, %v625_v56  ;;  %v738_v1 = vsel %vm586_vm3, %v1507_v55, %v1517_v58  ;;  %vm492_vm3 = vcmp.eq.s32.totalorder %v364_v62, 16  ;;  %v350_v56 = vsub.s32 %v314_v44, %v1489_v45 }
 0x193   : > { %v739_v2 = vsel %vm587_vm15, %v1507_v55, %v1517_v58  ;;  %v770_v3 = vmul.f32 %v738_v1, %v694_v61  ;;  %vm1981_vm13 = vmor %vm378_vm10, %vm410_vm4  ;;  %vm428_vm4 = vcmp.eq.s32.totalorder %v364_v62, 1  ;;  %v351_v60 = vsub.s32 %v315_v47, %v1489_v45 }
 0x194   : > { %v771_v6 = vmul.f32 %v739_v2, %v695_v0  ;;  %vm1988_vm8 = vmor %vm379_vm6, %vm411_vm7  ;;  %v608_v8 = vsel %vm1981_vm13, %v1493_v48, 0.0  ;;  %vm429_vm7 = vcmp.eq.s32.totalorder %v365_v63, 1 }
 0x195   : > { %vm538_vm1 = vmor %vm474_vm9, %vm506_vm0  ;;  %v609_v10 = vsel %vm1988_vm8, %v1493_v48, 0.0  ;;  %vm493_vm0 = vcmp.eq.s32.totalorder %v365_v63, 16  ;;  %vm380_vm8 = vcmp.eq.s32.totalorder %v348_v15, 0 }
 0x196   : > { %v1056_v11 = vpack.c.bf16 %v771_v6, %v770_v3  ;;  %vm539_vm11 = vmor %vm475_vm5, %vm507_vm12  ;;  %v646_v12 = vsel %vm538_vm1, %v1500_v53, 0.0  ;;  %vm524_vm12 = vcmp.eq.s32.totalorder %v364_v62, 17  ;;  %vm412_vm1 = vcmp.eq.s32.totalorder %v348_v15, 1 }
 0x197   : > { %vm570_vm15 = vmor %vm378_vm10, %vm474_vm9  ;;  %v647_v13 = vsel %vm539_vm11, %v1500_v53, 0.0  ;;  %v678_v14 = vadd.f32 %v646_v12, %v608_v8  ;;  %vm525_vm9 = vcmp.eq.s32.totalorder %v365_v63, 17  ;;  %vm381_vm11 = vcmp.eq.s32.totalorder %v349_v18, 0 }
 0x198   : > { %1057 = vmatprep.subr.bf16.mxu0 %v1056_v11  ;;  %vm571_vm13 = vmor %vm379_vm6, %vm475_vm5  ;;  %v679_v16 = vadd.f32 %v647_v13, %v609_v10  ;;  %v722_v17 = vsel %vm570_vm15, %v1507_v55, %v1517_v58 }
 0x199   : > { %v723_v19 = vsel %vm571_vm13, %v1507_v55, %v1517_v58  ;;  %v754_v20 = vmul.f32 %v722_v17, %v678_v14  ;;  %vm2015_vm10 = vmor %vm396_vm2, %vm428_vm4  ;;  %vm476_vm13 = vcmp.eq.s32.totalorder %v348_v15, 16 }
 0x19a   : > { %v755_v23 = vmul.f32 %v723_v19, %v679_v16  ;;  %vm2022_vm6 = vmor %vm397_vm14, %vm429_vm7  ;;  %v626_v25 = vsel %vm2015_vm10, %v1493_v48, 0.0  ;;  %vm413_vm7 = vcmp.eq.s32.totalorder %v349_v18, 1  ;;  %vm508_vm10 = vcmp.eq.s32.totalorder %v348_v15, 17 }
 0x19b   : > { %vm556_vm5 = vmor %vm492_vm3, %vm524_vm12  ;;  %v627_v27 = vsel %vm2022_vm6, %v1493_v48, 0.0  ;;  %vm398_vm6 = vcmp.eq.s32.totalorder %v366_v32, 0 }
 0x19c   : > { %v1058_v28 = vpack.c.bf16 %v755_v23, %v754_v20  ;;  %vm557_vm4 = vmor %vm493_vm0, %vm525_vm9  ;;  %v664_v29 = vsel %vm556_vm5, %v1500_v53, 0.0  ;;  %vm509_vm9 = vcmp.eq.s32.totalorder %v349_v18, 17  ;;  %vm430_vm5 = vcmp.eq.s32.totalorder %v366_v32, 1 }
 0x19d   : > { %vm588_vm15 = vmor %vm396_vm2, %vm492_vm3  ;;  %v665_v30 = vsel %vm557_vm4, %v1500_v53, 0.0  ;;  %v696_v31 = vadd.f32 %v664_v29, %v626_v25  ;;  %vm477_vm3 = vcmp.eq.s32.totalorder %v349_v18, 16  ;;  %vm399_vm4 = vcmp.eq.s32.totalorder %v367_v35, 0 }
 0x19e   : > { %1059 = vmatpush3.bf16.msra.mxu0 %v1058_v28  ;;  %vm589_vm12 = vmor %vm397_vm14, %vm493_vm0  ;;  %v697_v33 = vadd.f32 %v665_v30, %v627_v27  ;;  %v740_v34 = vsel %vm588_vm15, %v1507_v55, %v1517_v58 }
 0x19f   : > { %v741_v36 = vsel %vm589_vm12, %v1507_v55, %v1517_v58  ;;  %v772_v37 = vmul.f32 %v740_v34, %v696_v31  ;;  %vm2049_vm2 = vmor %vm380_vm8, %vm412_vm1  ;;  %vm494_vm12 = vcmp.eq.s32.totalorder %v366_v32, 16 }
 0x1a0   : > { %v773_v41 = vmul.f32 %v741_v36, %v697_v33  ;;  %vm2055_vm14 = vmor %vm381_vm11, %vm413_vm7  ;;  %v610_v43 = vsel %vm2049_vm2, %v1493_v48, 0.0  ;;  %vm431_vm7 = vcmp.eq.s32.totalorder %v367_v35, 1 }
 0x1a1   : > { %vm540_vm0 = vmor %vm476_vm13, %vm508_vm10  ;;  %v611_v46 = vsel %vm2055_vm14, %v1493_v48, 0.0  ;;  %vm495_vm10 = vcmp.eq.s32.totalorder %v367_v35, 16 }
 0x1a2   : > { %v1060_v49 = vpack.c.bf16 %v773_v41, %v772_v37  ;;  %vm541_vm1 = vmor %vm477_vm3, %vm509_vm9  ;;  %v648_v50 = vsel %vm540_vm0, %v1500_v53, 0.0  ;;  %vm526_vm9 = vcmp.eq.s32.totalorder %v366_v32, 17  ;;  %vm382_vm0 = vcmp.eq.s32.totalorder %v350_v56, 0 }
 0x1a3   : > { %vm572_vm15 = vmor %vm380_vm8, %vm476_vm13  ;;  %v649_v51 = vsel %vm541_vm1, %v1500_v53, 0.0  ;;  %v680_v52 = vadd.f32 %v648_v50, %v610_v43  ;;  %vm527_vm13 = vcmp.eq.s32.totalorder %v367_v35, 17 }
 0x1a4   : > { %1061 = vmatprep.subr.bf16.mxu0 %v1060_v49  ;;  %vm573_vm2 = vmor %vm381_vm11, %vm477_vm3  ;;  %v681_v39 = vadd.f32 %v649_v51, %v611_v46  ;;  %v724_v54 = vsel %vm572_vm15, %v1507_v55, %v1517_v58  ;;  %vm415_vm15 = vcmp.eq.s32.totalorder %v351_v60, 1 }
 0x1a5   : > { %v725_v57 = vsel %vm573_vm2, %v1507_v55, %v1517_v58  ;;  %v756_v59 = vmul.f32 %v724_v54, %v680_v52  ;;  %vm462_vm8 = vmor %vm398_vm6, %vm430_vm5  ;;  %vm414_vm5 = vcmp.eq.s32.totalorder %v350_v56, 1 }
 0x1a6   : > { %v757_v61 = vmul.f32 %v725_v57, %v681_v39  ;;  %vm2085_vm11 = vmor %vm399_vm4, %vm431_vm7  ;;  %v628_v63 = vsel %vm462_vm8, %v1493_v48, 0.0  ;;  %vm383_vm7 = vcmp.eq.s32.totalorder %v351_v60, 0  ;;  %vm510_vm8 = vcmp.eq.s32.totalorder %v350_v56, 17 }
 0x1a7   : > { %vm558_vm3 = vmor %vm494_vm12, %vm526_vm9  ;;  %v629_v0 = vsel %vm2085_vm11, %v1493_v48, 0.0  ;;  %vm478_vm9 = vcmp.eq.s32.totalorder %v350_v56, 16 }
 0x1a8   : > { %v1062_v1 = vpack.c.bf16 %v757_v61, %v756_v59  ;;  %vm559_vm14 = vmor %vm495_vm10, %vm527_vm13  ;;  %v666_v45 = vsel %vm558_vm3, %v1500_v53, 0.0  ;;  %vm511_vm13 = vcmp.eq.s32.totalorder %v351_v60, 17 }
 0x1a9   : > { %vm590_vm1 = vmor %vm398_vm6, %vm494_vm12  ;;  %v667_v2 = vsel %vm559_vm14, %v1500_v53, 0.0  ;;  %v698_v3 = vadd.f32 %v666_v45, %v628_v63  ;;  %vm479_vm12 = vcmp.eq.s32.totalorder %v351_v60, 16 }
 0x1aa   : > { %1063 = vmatpush3.bf16.msra.mxu0 %v1062_v1  ;;  %vm591_vm2 = vmor %vm399_vm4, %vm495_vm10  ;;  %v699_v4 = vadd.f32 %v667_v2, %v629_v0  ;;  %v742_v5 = vsel %vm590_vm1, %v1507_v55, %v1517_v58 }
 0x1ab   : > { %v743_v6 = vsel %vm591_vm2, %v1507_v55, %v1517_v58  ;;  %v774_v7 = vmul.f32 %v742_v5, %v698_v3  ;;  %vm446_vm6 = vmor %vm382_vm0, %vm414_vm5 }
 0x1ac   : > { %v775_v8 = vmul.f32 %v743_v6, %v699_v4  ;;  %vm447_vm11 = vmor %vm383_vm7, %vm415_vm15  ;;  %v612_v9 = vsel %vm446_vm6, %v1493_v48, 0.0 }
 0x1ad   : > { %vm542_vm4 = vmor %vm478_vm9, %vm510_vm8  ;;  %v613_v10 = vsel %vm447_vm11, %v1493_v48, 0.0 }
 0x1ae   : > { %v1064_v11 = vpack.c.bf16 %v775_v8, %v774_v7  ;;  %vm543_vm10 = vmor %vm479_vm12, %vm511_vm13  ;;  %v650_v12 = vsel %vm542_vm4, %v1500_v53, 0.0 }
 0x1af   : > { %vm574_vm3 = vmor %vm382_vm0, %vm478_vm9  ;;  %v651_v13 = vsel %vm543_vm10, %v1500_v53, 0.0  ;;  %v682_v14 = vadd.f32 %v650_v12, %v612_v9  ;;  %v777_v53 = vld [vmem:[%s1475_s30] sm:$0xf] }
 0x1b0   : > { %1065 = vmatprep.subr.bf16.mxu0 %v1064_v11  ;;  %vm575_vm14 = vmor %vm383_vm7, %vm479_vm12  ;;  %v683_v15 = vadd.f32 %v651_v13, %v613_v10  ;;  %v726_v16 = vsel %vm574_vm3, %v1507_v55, %v1517_v58 }
 0x1b1   : > { %v727_v48 = vsel %vm575_vm14, %v1507_v55, %v1517_v58  ;;  %v758_v17 = vmul.f32 %v726_v16, %v682_v14 }
 0x1b2   : > { %v759_v18 = vmul.f32 %v727_v48, %v683_v15 }
 0x1b4   : > { %v1066_v19 = vpack.c.bf16 %v759_v18, %v758_v17 }
 0x1b6   : > { %1067 = vmatpush3.bf16.msra.mxu0 %v1066_v19 }
 0x1b9   : > { %846 = vmatmul.mubr.f32.vlgmr.msra.gmra.mrb[0].mxu0 %v1479_v38 }
 0x28c   : > { %v1033_v20 = vpop.f32.mrb[0].mxu0 }
 0x28d   : > { %v1034_v21 = vpop.f32.mrb[1].mxu0 }
 0x28e   : > { %v1035_v22 = vadd.f32 %v1034_v21, %v1033_v20 }
 0x290   : > { %v851_v23 = vadd.f32 %v1035_v22, %v777_v53 }
 0x292   : > { %852 = vst [vmem:[%s1475_s30] sm:$0xf] %v851_v23 }
 0x293 PF: > { %s997_s20 = sshll.u32 %s1281_s12, 6  ;;  %s868_s25 = sshll.u32 %s1475_s30, 4  ;;  %s869_s25 = int_to_ptr.vmem [resolvable:$true] %s868_s25 }
 0x294   : > { %s2126_s28 = scalar_lea.hbm %s2172_s2, %s997_s20  ;;  %s854_s3 = scalar_lea.sflag [#allocation9], %s1458_s15 }
 0x295   : > { %s1203_s7 = scalar_lea.vmem %s869_s25, 64  ;;  %p2243_p7 = scmp.ne.s32.totalorder %s2177_s22, 0 }
 0x296   : > { %p1204_p5 = scmp.ne.s32.totalorder %s869_s25, %s1203_s7  ;;  %s1294_s8 = smov [#allocation12]  }
 0x297   : > { %s1207_s18 = sshll.u32 %s1294_s8, 4  ;;  %s1208_s18 = int_to_ptr.vmem [resolvable:$false] %s1207_s18 }
 0x298   : > { %p1205_p4 = pnand %p1204_p5, %p2243_p7  ;;  %s1209_s4 = scalar_lea.vmem %s1208_s18, 128 }
 0x299   : > { %p1210_p12 = scmp.lt.s32.totalorder %s869_s25, %s1208_s18  ;;  %p1211_p1 = scmp.lt.s32.totalorder %s1209_s4, %s1203_s7 }
 0x29a   : > { %p1206_p10 = pneg %p1205_p4 }
 0x29b   : > { %p1212_p2 = por %p1211_p1, %p1210_p12 }
 0x29d   : > { %p1213_p9 = pnand %p1212_p2, %p1206_p10 }
 0x29f   : > { %1216 = shalt.err (!%p1213_p9)
}
 0x2a0   : > { %s1217_s12 = scalar_lea.hbm %s2126_s28, 64  ;;  %s1221_s5 = scalar_lea.hbm %s2172_s2, 128 }
 0x2a1   : > { %p1218_p11 = scmp.ne.s32.totalorder %s2126_s28, %s1217_s12  ;;  %p1222_p13 = scmp.lt.u32.totalorder %s2126_s28, %s2172_s2 }
 0x2a2   : > { %p1223_p8 = scmp.lt.u32.totalorder %s1221_s5, %s1217_s12  ;;  %p1225_p5 = scmp.lt.u32.totalorder %s1217_s12, %s2126_s28 }
 0x2a3   : > { %p1219_p3 = pnand %p1218_p11, %p2243_p7 }
 0x2a4   : > { %p1224_p0 = por %p1223_p8, %p1222_p13 }
 0x2a5   : > { %p1220_p6 = pneg %p1219_p3 }
 0x2a6   : > { %p1226_p4 = por %p1225_p5, %p1224_p0 }
 0x2a8   : > { %p1227_p10 = pnand %p1226_p4, %p1220_p6 }
 0x2aa   : > { %1230 = shalt.err (!%p1227_p10)
}
 0x2ab   : > { %1078 = dma.vmem_to_hbm [thread:$0]  (%p2243_p7), %s869_s25, 64, %s2126_s28, %s854_s3  }
 0x2ac PF: > { %s880_s19 = sand.u32 1, %s1269_s9   ;;  %p2244_p12 = scmp.ne.s32.totalorder %s2178_s24, 0 }
 0x2ad   : > { %p2245_p1 = scmp.ge.s32.totalorder %s1289_s14, 2  ;;  %s881_s30 = scalar_lea.sflag [#allocation9], %s880_s19 }
 0x2af   : > { %p1088_p2 = pnand %p2245_p1, %p2244_p12 }
 0x2b1   : > { %1264 = dma.done.wait (!%p1088_p2), %s881_s30, 64  }
 0x2b2   : > { %1266 = vsyncadd (!%p1088_p2), %s881_s30, 4294967232  ;;  %s21_s14 = sadd.s32 1, %s1289_s14   ;;  %s2246_s9 = smov %s1273_s10 }
 0x2b3   : > { %p18_p9 = scmp.ge.s32.totalorder %s21_s14, 4   ;;  %s2247_s10 = smov %s1277_s11 }
 0x2b4   : > { %s2248_s11 = smov %s1366_s23  ;;  %s2249_s12 = smov %s1285_s13 }
 0x2b5   : > { %s2250_s13 = smov %s2252_s17  ;;  %20 = sbr.rel (!%p18_p9) target bundleno = 8 (0x8), region = 94 }
 0x2bc   :  { %886 = vsyncpa [#allocation8], 1 }
 0x2bd   :  { %888 = vsyncpa [#allocation8 + $0x1], 1 }
 0x2be   :  { %889 = vsyncpa [#allocation11], 1 }
 0x2bf   :  { %891 = vsyncpa [#allocation11 + $0x1], 1 }
 0x2c0   :  { %892 = vsyncpa [#allocation9], 1 }
 0x2c1   :  { %894 = vsyncpa [#allocation9 + $0x1], 1 }

</bundles_post_ra>
